<compile_context>
chip_gen: v6e
topology: v6e:2x2x1
jax: 0.10.0
libtpu: 0.0.40
codegen_flags: <defaults>
</compile_context>

<pallas_src>
import functools

import jax
import jax.numpy as jnp
from jax.experimental import pallas as pl
from jax.experimental.pallas import tpu as pltpu


def _critic_kernel(obs_ref, w1_ref, b1_ref, w2_ref, b2_ref, w3t_ref, b3_ref,
                   out_ref):
    # obs_ref: (TILE_B, obs_dim) bf16   w1: (obs_dim, h1) bf16   b1: (1, h1) f32
    # w2: (h1, h2) bf16   b2: (1, h2) f32   w3t: (1, h2) f32     b3: (1, 1) f32
    x = obs_ref[...]                                            # bf16 MXU input

    # Layer 1: bf16 MXU matmul, f32 accumulate, f32 bias + tanh.
    h1 = jnp.dot(x, w1_ref[...], preferred_element_type=jnp.float32)
    h1 = jnp.tanh(h1 + b1_ref[...])                             # f32 (portable EUP path)

    # Layer 2: cast activations to bf16 only at the MXU input.
    h2 = jnp.dot(h1.astype(jnp.bfloat16), w2_ref[...],
                 preferred_element_type=jnp.float32)
    h2 = jnp.tanh(h2 + b2_ref[...])

    # Layer 3 (out_features == 1): VPU multiply + cross-lane reduce instead of
    # an N=1 MXU matmul.  Identity output activation.
    v = jnp.sum(h2 * w3t_ref[...], axis=-1, keepdims=True) + b3_ref[...]

    out_ref[...] = v.astype(out_ref.dtype)


def mlp_critic_forward(obs, params, tile_b=1024):
    """obs: [B, obs_dim] float32.  Returns value estimates of shape [B]."""
    (w1, b1), (w2, b2), (w3, b3) = params
    B, obs_dim = obs.shape
    h1_dim = w1.shape[1]
    h2_dim = w2.shape[1]

    # bf16 for the streamed / MXU-side operands; biases and the tiny final
    # column stay f32 (they feed the f32 VPU/EUP path).
    obs_bf = obs.astype(jnp.bfloat16)
    w1_bf = w1.astype(jnp.bfloat16)
    w2_bf = w2.astype(jnp.bfloat16)
    w3_t = w3.astype(jnp.float32).reshape(1, h2_dim)   # (h2, 1) -> (1, h2)
    b1_f = b1.astype(jnp.float32)
    b2_f = b2.astype(jnp.float32)
    b3_f = b3.astype(jnp.float32)

    # Big tiles amortize the ~0.35 us/grid-step overhead; for small batches
    # use the whole batch in one tile (block dim equal to array dim is legal).
    # VMEM per step at tile_b=1024: obs 32 KiB (bf16) + out 4 KiB, x2 buffers,
    # + ~7 KiB resident weights -> far under every generation's limit.
    tile_b = tile_b if B >= tile_b else B
    num_tiles = pl.cdiv(B, tile_b)

    def resident(arr):
        # Whole array as one block, same block every grid step -> stays in VMEM.
        return pl.BlockSpec(arr.shape, lambda i: (0, 0))

    out2d = pl.pallas_call(
        _critic_kernel,
        out_shape=jax.ShapeDtypeStruct((B, 1), jnp.float32),
        grid_spec=pltpu.PrefetchScalarGridSpec(
            num_scalar_prefetch=0,
            grid=(num_tiles,),
            in_specs=[
                pl.BlockSpec((tile_b, obs_dim), lambda i: (i, 0)),   # streamed
                resident(w1_bf), resident(b1_f),
                resident(w2_bf), resident(b2_f),
                resident(w3_t), resident(b3_f),
            ],
            out_specs=pl.BlockSpec((tile_b, 1), lambda i: (i, 0)),
        ),
        compiler_params=pltpu.CompilerParams(
            dimension_semantics=("parallel",)),   # megacore sharding on v7x
    )(obs_bf, w1_bf, b1_f, w2_bf, b2_f, w3_t, b3_f)

    # torch.squeeze(..., -1): drop the trailing singleton value dim.
    return jnp.squeeze(out2d, -1)


def init_params(key, obs_dim, hidden_sizes):
    """Deterministic PyTorch-Linear-style init (U[-1/sqrt(fan_in), 1/sqrt(fan_in)]).

    Weights stored as [in_features, out_features] (transposed vs. nn.Linear);
    biases as [1, out_features] for broadcast.
    """
    sizes = [obs_dim] + list(hidden_sizes) + [1]
    params = []
    for j in range(len(sizes) - 1):
        fan_in, fan_out = sizes[j], sizes[j + 1]
        key, kw, kb = jax.random.split(key, 3)
        bound = 1.0 / jnp.sqrt(jnp.float32(fan_in))
        w = jax.random.uniform(kw, (fan_in, fan_out), jnp.float32, -bound, bound)
        b = jax.random.uniform(kb, (1, fan_out), jnp.float32, -bound, bound)
        params.append((w, b))
    return params


def reference_forward(obs, params):
    x = obs
    for i, (w, b) in enumerate(params):
        x = x @ w + b
        if i < len(params) - 1:
            x = jnp.tanh(x)
    return jnp.squeeze(x, -1)


if __name__ == "__main__":
    obs_dim = 16
    hidden_sizes = (32, 32)
    batch = 8

    key = jax.random.PRNGKey(0)
    key, kobs = jax.random.split(key)
    obs = jax.random.normal(kobs, (batch, obs_dim), jnp.float32)

    params = init_params(key, obs_dim, hidden_sizes)

    v = mlp_critic_forward(obs, params)
    v = jax.block_until_ready(v)

    v_ref = reference_forward(obs, params)
    assert v.shape == (batch,), v.shape
    # Tolerance relaxed vs. the pure-f32 version because obs/w1/w2 are fed to
    # the MXU in bf16 (accumulation stays f32) -- acceptable for a value critic.
    assert jnp.allclose(v, v_ref, atol=3e-2, rtol=3e-2), (v, v_ref)

    print("KERNEL_OK")
</pallas_src>

<mosaic_0001>
module attributes {stable_mosaic.version = 11 : i64} {
  func.func @_critic_kernel(%arg0: i32, %arg1: memref<8x16xbf16, #tpu.memory_space<vmem>>, %arg2: memref<16x32xbf16, #tpu.memory_space<vmem>>, %arg3: memref<1x32xf32, #tpu.memory_space<vmem>>, %arg4: memref<32x32xbf16, #tpu.memory_space<vmem>>, %arg5: memref<1x32xf32, #tpu.memory_space<vmem>>, %arg6: memref<1x32xf32, #tpu.memory_space<vmem>>, %arg7: memref<1x1xf32, #tpu.memory_space<vmem>>, %arg8: memref<8x1xf32, #tpu.memory_space<vmem>>) attributes {dimension_semantics = [#tpu.dimension_semantics<parallel>], iteration_bounds = array<i64: 1>, scalar_prefetch = 0 : i64, scratch_operands = 0 : i64, tpu.core_type = #tpu.core_type<tc>, window_params = [{transform_indices = @transform_0, window_bounds = array<i64: 8, 16>}, {pipeline_mode = #tpu.pipeline_mode<synchronous>, transform_indices = @transform_1, window_bounds = array<i64: 16, 32>}, {pipeline_mode = #tpu.pipeline_mode<synchronous>, transform_indices = @transform_2, window_bounds = array<i64: 1, 32>}, {pipeline_mode = #tpu.pipeline_mode<synchronous>, transform_indices = @transform_3, window_bounds = array<i64: 32, 32>}, {pipeline_mode = #tpu.pipeline_mode<synchronous>, transform_indices = @transform_4, window_bounds = array<i64: 1, 32>}, {pipeline_mode = #tpu.pipeline_mode<synchronous>, transform_indices = @transform_5, window_bounds = array<i64: 1, 32>}, {pipeline_mode = #tpu.pipeline_mode<synchronous>, transform_indices = @transform_6, window_bounds = array<i64: 1, 1>}, {transform_indices = @transform_7, window_bounds = array<i64: 8, 1>}]} {
    %c0 = arith.constant 0 : index
    %c0_0 = arith.constant 0 : index
    %0 = vector.load %arg1[%c0, %c0_0] : memref<8x16xbf16, #tpu.memory_space<vmem>>, vector<8x16xbf16>
    %c0_1 = arith.constant 0 : index
    %c0_2 = arith.constant 0 : index
    %1 = vector.load %arg2[%c0_1, %c0_2] : memref<16x32xbf16, #tpu.memory_space<vmem>>, vector<16x32xbf16>
    %cst = arith.constant dense<0.000000e+00> : vector<8x32xf32>
    %2 = tpu.matmul %0, %1, %cst {dimension_numbers = #tpu.dot_dimension_numbers<[1], [0], [0], [1], [0, 0, 1, 1], [], []>} : vector<8x16xbf16>, vector<16x32xbf16>, vector<8x32xf32> -> vector<8x32xf32>
    %c0_3 = arith.constant 0 : index
    %c0_4 = arith.constant 0 : index
    %3 = vector.load %arg3[%c0_3, %c0_4] : memref<1x32xf32, #tpu.memory_space<vmem>>, vector<1x32xf32>
    %4 = vector.broadcast %3 : vector<1x32xf32> to vector<8x32xf32>
    %5 = arith.addf %2, %4 : vector<8x32xf32>
    %6 = math.tanh %5 : vector<8x32xf32>
    %7 = arith.truncf %6 : vector<8x32xf32> to vector<8x32xbf16>
    %c0_5 = arith.constant 0 : index
    %c0_6 = arith.constant 0 : index
    %8 = vector.load %arg4[%c0_5, %c0_6] : memref<32x32xbf16, #tpu.memory_space<vmem>>, vector<32x32xbf16>
    %cst_7 = arith.constant dense<0.000000e+00> : vector<8x32xf32>
    %9 = tpu.matmul %7, %8, %cst_7 {dimension_numbers = #tpu.dot_dimension_numbers<[1], [0], [0], [1], [0, 0, 1, 1], [], []>} : vector<8x32xbf16>, vector<32x32xbf16>, vector<8x32xf32> -> vector<8x32xf32>
    %c0_8 = arith.constant 0 : index
    %c0_9 = arith.constant 0 : index
    %10 = vector.load %arg5[%c0_8, %c0_9] : memref<1x32xf32, #tpu.memory_space<vmem>>, vector<1x32xf32>
    %11 = vector.broadcast %10 : vector<1x32xf32> to vector<8x32xf32>
    %12 = arith.addf %9, %11 : vector<8x32xf32>
    %13 = math.tanh %12 : vector<8x32xf32>
    %c0_10 = arith.constant 0 : index
    %c0_11 = arith.constant 0 : index
    %14 = vector.load %arg6[%c0_10, %c0_11] : memref<1x32xf32, #tpu.memory_space<vmem>>, vector<1x32xf32>
    %15 = vector.broadcast %14 : vector<1x32xf32> to vector<8x32xf32>
    %16 = arith.mulf %13, %15 : vector<8x32xf32>
    %cst_12 = arith.constant dense<0.000000e+00> : vector<8xf32>
    %17 = vector.multi_reduction <add>, %16, %cst_12 [1] : vector<8x32xf32> to vector<8xf32>
    %18 = vector.shape_cast %17 : vector<8xf32> to vector<8x1xf32>
    %c0_13 = arith.constant 0 : index
    %c0_14 = arith.constant 0 : index
    %19 = vector.load %arg7[%c0_13, %c0_14] : memref<1x1xf32, #tpu.memory_space<vmem>>, vector<1x1xf32>
    %20 = vector.broadcast %19 : vector<1x1xf32> to vector<8x1xf32>
    %21 = arith.addf %18, %20 : vector<8x1xf32>
    %c0_15 = arith.constant 0 : index
    %c0_16 = arith.constant 0 : index
    %22 = vector.load %arg8[%c0_15, %c0_16] : memref<8x1xf32, #tpu.memory_space<vmem>>, vector<8x1xf32>
    tpu.vector_store %arg8[%c0_15, %c0_16], %21 {strides = array<i32>} : memref<8x1xf32, #tpu.memory_space<vmem>>, vector<8x1xf32>,
    return
  }
  func.func @transform_0(%arg0: i32) -> (i32, i32) {
    %c0_i32 = arith.constant 0 : i32
    %c0_i32_0 = arith.constant 0 : i32
    return %arg0, %c0_i32 : i32, i32
  }
  func.func @transform_1(%arg0: i32) -> (i32, i32) {
    %c0_i32 = arith.constant 0 : i32
    %c0_i32_0 = arith.constant 0 : i32
    %c0_i32_1 = arith.constant 0 : i32
    return %c0_i32, %c0_i32_0 : i32, i32
  }
  func.func @transform_2(%arg0: i32) -> (i32, i32) {
    %c0_i32 = arith.constant 0 : i32
    %c0_i32_0 = arith.constant 0 : i32
    %c0_i32_1 = arith.constant 0 : i32
    return %c0_i32, %c0_i32_0 : i32, i32
  }
  func.func @transform_3(%arg0: i32) -> (i32, i32) {
    %c0_i32 = arith.constant 0 : i32
    %c0_i32_0 = arith.constant 0 : i32
    %c0_i32_1 = arith.constant 0 : i32
    return %c0_i32, %c0_i32_0 : i32, i32
  }
  func.func @transform_4(%arg0: i32) -> (i32, i32) {
    %c0_i32 = arith.constant 0 : i32
    %c0_i32_0 = arith.constant 0 : i32
    %c0_i32_1 = arith.constant 0 : i32
    return %c0_i32, %c0_i32_0 : i32, i32
  }
  func.func @transform_5(%arg0: i32) -> (i32, i32) {
    %c0_i32 = arith.constant 0 : i32
    %c0_i32_0 = arith.constant 0 : i32
    %c0_i32_1 = arith.constant 0 : i32
    return %c0_i32, %c0_i32_0 : i32, i32
  }
  func.func @transform_6(%arg0: i32) -> (i32, i32) {
    %c0_i32 = arith.constant 0 : i32
    %c0_i32_0 = arith.constant 0 : i32
    %c0_i32_1 = arith.constant 0 : i32
    return %c0_i32, %c0_i32_0 : i32, i32
  }
  func.func @transform_7(%arg0: i32) -> (i32, i32) {
    %c0_i32 = arith.constant 0 : i32
    %c0_i32_0 = arith.constant 0 : i32
    return %arg0, %c0_i32 : i32, i32
  }
}

</mosaic_0001>

<bundles_post_ra>
// kernel: tpu_custom_call.1
= control target key start
LH: loop header
LB: loop body
LE: loop exit
PB: predicated region body
PF: predicated region fallthrough
CT: control target
= control target key end

     0   :  { %s402_s0 = inlined_call_operand.hbm [shape: bf16[8,16], index: 0, kind: input, shape index: {}]   ;;  %s403_s1 = inlined_call_operand.hbm [shape: bf16[16,32], index: 1, kind: input, shape index: {}]   ;;  %s404_s2 = inlined_call_operand.vmem [shape: f32[1,32], index: 2, kind: input, shape index: {}]   ;;  %s405_s3 = inlined_call_operand.hbm [shape: bf16[32,32], index: 3, kind: input, shape index: {}]   ;;  %s406_s4 = inlined_call_operand.vmem [shape: f32[1,32], index: 4, kind: input, shape index: {}]   ;;  %s407_s5 = inlined_call_operand.vmem [shape: f32[1,32], index: 5, kind: input, shape index: {}]   ;;  %s408_s6 = inlined_call_operand.<no memory space> [shape: f32[1,1], index: 6, kind: input, shape index: {}]   ;;  %s409_s7 = inlined_call_operand.vmem [shape: f32[8,1], index: 7, kind: output, shape index: {}]  }
   0x1   :  { %v12_v0 = vstv %s408_s6 }
   0x2   :  { %13 = vst [vmem:[#allocation2] sm:$0x1] %v12_v0 }
   0x3   :  { %14 = vsyncpa [#allocation4], 0 }
   0x4   :  { %15 = vsyncpa [#allocation6], 0  ;;  %s331_s26 = smov [#allocation5]  }
   0x5   :  { %s31_s27 = sshll.u32 %s331_s26, 4  ;;  %s32_s27 = int_to_ptr.vmem [resolvable:$true] %s31_s27 }
   0x6   :  { %s275_s28 = scalar_lea.vmem %s32_s27, 128  ;;  %p280_p1 = scmp.lt.s32.totalorder %s32_s27, %s32_s27 }
   0x7   :  { %p276_p0 = scmp.ne.s32.totalorder %s32_s27, %s275_s28  ;;  %p281_p2 = scmp.lt.s32.totalorder %s275_s28, %s275_s28 }
   0x9   :  { %p282_p3 = por %p281_p2, %p280_p1 }
   0xb   :  { %p283_p4 = pnand %p282_p3, %p276_p0 }
   0xd   :  { %286 = shalt.err (!%p283_p4)
}
   0xe   :  { %s332_s29 = smov 64   ;;  %s333_s30 = smov 4  }
   0xf   :  { %37 = dma.hbm_to_vmem [thread:$0]  %s403_s1, 128, %s32_s27, [#allocation6], %s332_s29, %s332_s29, %s333_s30  }
  0x10   :  { %s334_s6 = smov [#allocation3]   ;;  %s335_s11 = smov [#allocation7]  }
  0x11   :  { %s22_s10 = sshll.u32 %s334_s6, 4  ;;  %s45_s12 = sshll.u32 %s335_s11, 4  ;;  %s23_s10 = int_to_ptr.vmem [resolvable:$true] %s22_s10  ;;  %s46_s12 = int_to_ptr.vmem [resolvable:$true] %s45_s12 }
  0x12   :  { %s295_s13 = scalar_lea.vmem %s23_s10, 64  ;;  %p300_p6 = scmp.lt.s32.totalorder %s23_s10, %s23_s10 }
  0x13   :  { %p296_p5 = scmp.ne.s32.totalorder %s23_s10, %s295_s13  ;;  %p301_p7 = scmp.lt.s32.totalorder %s295_s13, %s295_s13 }
  0x15   :  { %p302_p8 = por %p301_p7, %p300_p6 }
  0x17   :  { %p303_p9 = pnand %p302_p8, %p296_p5 }
  0x19   :  { %306 = shalt.err (!%p303_p9)
}
  0x1a   :  { %25 = dma.hbm_to_vmem [thread:$0]  %s402_s0, 64, %s23_s10, [#allocation4]  }
  0x1b   :  { %s315_s16 = scalar_lea.vmem %s46_s12, 256  ;;  %p320_p11 = scmp.lt.s32.totalorder %s46_s12, %s46_s12 }
  0x1c   :  { %p316_p10 = scmp.ne.s32.totalorder %s46_s12, %s315_s16  ;;  %p321_p12 = scmp.lt.s32.totalorder %s315_s16, %s315_s16 }
  0x1e   :  { %p322_p13 = por %p321_p12, %p320_p11 }
  0x20   :  { %p323_p0 = pnand %p322_p13, %p316_p10 }
  0x22   :  { %326 = shalt.err (!%p323_p0)
}
  0x23   :  { %51 = dma.hbm_to_vmem [thread:$0]  %s405_s3, 256, %s46_s12, [#allocation6], %s332_s29, %s332_s29, %s333_s30  }
  0x24   :  { %327 = dma.done.wait [#allocation4], 64  }
  0x25   :  { %328 = vsyncadd [#allocation4], 4294967232 }
  0x26   :  { %329 = dma.done.wait [#allocation6], 384  }
  0x27   :  { %330 = vsyncadd [#allocation6], 4294966912  ;;  %v336_v1 = vmov 0.0   ;;  %vm337_vm0 = vmmov 0   ;;  %v260_v2 = vld [vmem:[#allocation5] sm:$0xff]   ;;  %vm84_vm1 = vcmask 130048  }
  0x28   :  { %239 = vmatprep.subr.bf16.mxu0 %v336_v1  ;;  %241 = vmatprep.mubr.msk.bf16.mxu0 %vm337_vm0, %v336_v1  ;;  %v68_v3 = vld [vmem:[#allocation3] sm:$0xf]  ;;  %v261_v4 = vld [vmem:[#allocation7 + $0x8] sm:$0xff]   ;;  %v262_v5 = vld [vmem:[#allocation7] sm:$0xff]   ;;  %vm153_vm2 = vcmask 261120   ;;  %vm217_vm3 = vcmask 7168  }
  0x29   :  { %245 = vmatprep.subr.bf16.mxu1 %v336_v1  ;;  %249 = vmatprep.mubr.msk.bf16.mxu1 %vm337_vm0, %v336_v1  ;;  %v225_v6 = vld [vmem:[%s404_s2] ss:$0 sm:$0xff] }
  0x2a   :  { %240 = vmatpush3.bf16.msra.mxu0 %v260_v2  ;;  %246 = vmatpush3.bf16.msra.mxu1 %v261_v4  ;;  %v228_v14 = vld [vmem:[%s406_s4] ss:$0 sm:$0xff] }
  0x2b   :  { %247 = vmatprep.subr.bf16.mxu1 %v336_v1  ;;  %v232_v20 = vld [vmem:[%s407_s5] ss:$0 sm:$0xff] }
  0x2c   :  { %v233_v24 = vld [vmem:[#allocation2] ss:$0 sm:$0xff] }
  0x2d   :  { %242 = vmatmul.mubr.msk.bf16.vlgmr.msra.gmra.mxu0 %vm84_vm1, %v68_v3 }
  0x2e   :  { %248 = vmatpush3.bf16.msra.mxu1 %v262_v5 }
  0xed   :  { %v122_v7 = vpop.f32.mrf.mxu0 }
  0xee   :  { %v123_v8 = vadd.f32 %v225_v6, %v122_v7 }
  0xef   :  { %v243_v9 = vpop.f32.mrf.mxu0 }
  0xf0   :  { %263 = vtanh.f32 %v123_v8 }
  0xf1   :  { %v125_v10 = vpop.f32.mrf.mxu0 }
  0xf3   :  { %v244_v11 = vpop.f32.mrf.mxu0 }
  0xfd   :  { %v264_v12 = vpop.eup %263 }
  0xfe   :  { %v129_v13 = vpack.c.bf16 %v264_v12, %v264_v12 }
 0x100   :  { %250 = vmatmul.mubr.msk.bf16.vlgmr.msra.gmra.mxu1 %vm153_vm2, %v129_v13 }
 0x1c0   :  { %v191_v15 = vpop.f32.mrf.mxu1 }
 0x1c1   :  { %v192_v16 = vadd.f32 %v228_v14, %v191_v15 }
 0x1c2   :  { %v251_v17 = vpop.f32.mrf.mxu1 }
 0x1c3   :  { %265 = vtanh.f32 %v192_v16 }
 0x1c4   :  { %v194_v18 = vpop.f32.mrf.mxu1 }
 0x1c6   :  { %v252_v19 = vpop.f32.mrf.mxu1 }
 0x1d0   :  { %v266_v21 = vpop.eup %265 }
 0x1d1   :  { %v205_v22 = vmul.f32 %v266_v21, %v232_v20 }
 0x1d3   :  { %v206_v23 = vsel %vm153_vm2, %v205_v22, 0.0 }
 0x1d4   :  { %207 = vadd.xlane.f32.xlu0 %v206_v23 }
 0x25d   :  { %v208_v25 = vpop.xlane.xlu0 %207 }
 0x25e   :  { %v216_v26 = vadd.f32 %v233_v24, %v208_v25 }
 0x260   :  { %218 = vst.msk [vmem:[%s409_s7] sm:$0xff] %vm217_vm3, %v216_v26 }
 0x261   :  { %223 = vsyncpa [#allocation4], 1 }
 0x262   :  { %224 = vsyncpa [#allocation6], 1 }

</bundles_post_ra>
